<compile_context>
chip_gen: v5e
topology: v5e:2x2
jax: 0.10.0
libtpu: 0.0.40
codegen_flags: <defaults>
</compile_context>

<pallas_src>
import jax
import jax.numpy as jnp
from jax.experimental import pallas as pl
from jax.experimental.pallas import tpu as pltpu


def _mlp_kernel(x_ref, w1_ref, b1_ref, w2_ref, b2_ref, o_ref):
    # hidden = relu(x @ W1 + b1)
    h = jnp.dot(x_ref[...], w1_ref[...], preferred_element_type=jnp.float32)
    h = jnp.maximum(h + b1_ref[...], 0.0)            # (TB, H) + (1, H) broadcast
    # out = h @ W2 + b2   (W2/b2 already lane-padded to D_out_p)
    y = jnp.dot(h, w2_ref[...], preferred_element_type=jnp.float32)
    o_ref[...] = (y + b2_ref[...]).astype(o_ref.dtype)


def main_model_forward(x, w1, b1, w2, b2, *, block_rows=512):
    """x: (B, D_in); w1: (D_in, H); b1: (H,); w2: (H, D_out); b2: (D_out,)."""
    B, D_in = x.shape
    H = w1.shape[1]
    D_out = w2.shape[1]

    # ---- lane-dense output: pad output feature dim up to a multiple of 128 ----
    D_out_p = max(128, pl.cdiv(D_out, 128) * 128)
    w2_p = jnp.zeros((H, D_out_p), dtype=w2.dtype).at[:, :D_out].set(w2)
    b2_p = jnp.zeros((1, D_out_p), dtype=b2.dtype).at[0, :D_out].set(b2)
    b1_2d = b1.reshape(1, H)

    # ---- batch tiling: row tile TB (multiple of 8), pad B up to a multiple ----
    TB = min(block_rows, pl.cdiv(B, 8) * 8)
    TB = max(8, pl.cdiv(TB, 8) * 8)
    B_pad = pl.cdiv(B, TB) * TB
    if B_pad != B:
        x = jnp.pad(x, ((0, B_pad - B), (0, 0)))
    num_tiles = B_pad // TB

    flops = 2 * B_pad * (D_in * H + H * D_out_p)
    bytes_accessed = 4 * (
        B_pad * D_in            # x in
        + D_in * H + H          # w1, b1
        + H * D_out_p + D_out_p  # w2, b2 (padded)
        + B_pad * D_out_p       # out
    )

    out_padded = pl.pallas_call(
        _mlp_kernel,
        out_shape=jax.ShapeDtypeStruct((B_pad, D_out_p), x.dtype),
        grid_spec=pltpu.PrefetchScalarGridSpec(
            num_scalar_prefetch=0,
            grid=(num_tiles,),
            in_specs=[
                pl.BlockSpec((TB, D_in), lambda i: (i, 0)),        # x tile (pipelined)
                pl.BlockSpec((D_in, H), lambda i: (0, 0)),         # w1 (resident)
                pl.BlockSpec((1, H), lambda i: (0, 0)),            # b1 (resident)
                pl.BlockSpec((H, D_out_p), lambda i: (0, 0)),      # w2 (resident, padded)
                pl.BlockSpec((1, D_out_p), lambda i: (0, 0)),      # b2 (resident, padded)
            ],
            out_specs=pl.BlockSpec((TB, D_out_p), lambda i: (i, 0)),
        ),
        compiler_params=pltpu.CompilerParams(
            dimension_semantics=("parallel",),
        ),
        cost_estimate=pl.CostEstimate(
            flops=flops, transcendentals=0, bytes_accessed=bytes_accessed
        ),
    )(x, w1, b1_2d, w2_p, b2_p)

    # Strip batch padding and the lane padding of the output features.
    return out_padded[:B, :D_out]


def _reference(x, w1, b1, w2, b2):
    return jnp.maximum(x @ w1 + b1, 0.0) @ w2 + b2


if __name__ == "__main__":
    # Shapes implied by the module: len(input_labels)=6 features, hidden=20,
    # len(output_labels)=2 outputs; small batch of 8.
    B, D_IN, HIDDEN, D_OUT = 8, 6, 20, 2

    key = jax.random.PRNGKey(0)
    k_x, k_w1, k_b1, k_w2, k_b2, k_x2 = jax.random.split(key, 6)

    x = jax.random.normal(k_x, (B, D_IN), dtype=jnp.float32)
    # Deterministic synthetic parameters (not a checkpoint load), stored already
    # transposed relative to torch's (out, in) convention.
    w1 = jax.random.normal(k_w1, (D_IN, HIDDEN), dtype=jnp.float32) * 0.1
    b1 = jax.random.normal(k_b1, (HIDDEN,), dtype=jnp.float32) * 0.1
    w2 = jax.random.normal(k_w2, (HIDDEN, D_OUT), dtype=jnp.float32) * 0.1
    b2 = jax.random.normal(k_b2, (D_OUT,), dtype=jnp.float32) * 0.1

    out = main_model_forward(x, w1, b1, w2, b2)
    jax.block_until_ready(out)
    ref = _reference(x, w1, b1, w2, b2)
    assert out.shape == (B, D_OUT)
    assert jnp.allclose(out, ref, atol=1e-5, rtol=1e-5)

    # Also exercise the batch-tiled / padded path (B not a multiple of the tile).
    B2 = 37
    x2 = jax.random.normal(k_x2, (B2, D_IN), dtype=jnp.float32)
    out2 = main_model_forward(x2, w1, b1, w2, b2, block_rows=16)
    jax.block_until_ready(out2)
    ref2 = _reference(x2, w1, b1, w2, b2)
    assert out2.shape == (B2, D_OUT)
    assert jnp.allclose(out2, ref2, atol=1e-5, rtol=1e-5)

    print("KERNEL_OK")
</pallas_src>

<mosaic_0001>
module attributes {stable_mosaic.version = 11 : i64} {
  func.func @_mlp_kernel(%arg0: i32, %arg1: memref<8x6xf32, #tpu.memory_space<vmem>>, %arg2: memref<6x20xf32, #tpu.memory_space<vmem>>, %arg3: memref<1x20xf32, #tpu.memory_space<vmem>>, %arg4: memref<20x128xf32, #tpu.memory_space<vmem>>, %arg5: memref<1x128xf32, #tpu.memory_space<vmem>>, %arg6: memref<8x128xf32, #tpu.memory_space<vmem>>) attributes {dimension_semantics = [#tpu.dimension_semantics<parallel>], iteration_bounds = array<i64: 1>, scalar_prefetch = 0 : i64, scratch_operands = 0 : i64, tpu.core_type = #tpu.core_type<tc>, window_params = [{transform_indices = @transform_0, window_bounds = array<i64: 8, 6>}, {pipeline_mode = #tpu.pipeline_mode<synchronous>, transform_indices = @transform_1, window_bounds = array<i64: 6, 20>}, {pipeline_mode = #tpu.pipeline_mode<synchronous>, transform_indices = @transform_2, window_bounds = array<i64: 1, 20>}, {pipeline_mode = #tpu.pipeline_mode<synchronous>, transform_indices = @transform_3, window_bounds = array<i64: 20, 128>}, {pipeline_mode = #tpu.pipeline_mode<synchronous>, transform_indices = @transform_4, window_bounds = array<i64: 1, 128>}, {transform_indices = @transform_5, window_bounds = array<i64: 8, 128>}]} {
    %c0 = arith.constant 0 : index
    %c0_0 = arith.constant 0 : index
    %0 = vector.load %arg1[%c0, %c0_0] : memref<8x6xf32, #tpu.memory_space<vmem>>, vector<8x6xf32>
    %c0_1 = arith.constant 0 : index
    %c0_2 = arith.constant 0 : index
    %1 = vector.load %arg2[%c0_1, %c0_2] : memref<6x20xf32, #tpu.memory_space<vmem>>, vector<6x20xf32>
    %cst = arith.constant dense<0.000000e+00> : vector<8x20xf32>
    %2 = tpu.matmul %0, %1, %cst {dimension_numbers = #tpu.dot_dimension_numbers<[1], [0], [0], [1], [0, 0, 1, 1], [], []>} : vector<8x6xf32>, vector<6x20xf32>, vector<8x20xf32> -> vector<8x20xf32>
    %c0_3 = arith.constant 0 : index
    %c0_4 = arith.constant 0 : index
    %3 = vector.load %arg3[%c0_3, %c0_4] : memref<1x20xf32, #tpu.memory_space<vmem>>, vector<1x20xf32>
    %4 = vector.broadcast %3 : vector<1x20xf32> to vector<8x20xf32>
    %5 = arith.addf %2, %4 : vector<8x20xf32>
    %cst_5 = arith.constant 0.000000e+00 : f32
    %6 = vector.broadcast %cst_5 : f32 to vector<8x20xf32>
    %7 = arith.maximumf %5, %6 : vector<8x20xf32>
    %c0_6 = arith.constant 0 : index
    %c0_7 = arith.constant 0 : index
    %8 = vector.load %arg4[%c0_6, %c0_7] : memref<20x128xf32, #tpu.memory_space<vmem>>, vector<20x128xf32>
    %cst_8 = arith.constant dense<0.000000e+00> : vector<8x128xf32>
    %9 = tpu.matmul %7, %8, %cst_8 {dimension_numbers = #tpu.dot_dimension_numbers<[1], [0], [0], [1], [0, 0, 1, 1], [], []>} : vector<8x20xf32>, vector<20x128xf32>, vector<8x128xf32> -> vector<8x128xf32>
    %c0_9 = arith.constant 0 : index
    %c0_10 = arith.constant 0 : index
    %10 = vector.load %arg5[%c0_9, %c0_10] : memref<1x128xf32, #tpu.memory_space<vmem>>, vector<1x128xf32>
    %11 = vector.broadcast %10 : vector<1x128xf32> to vector<8x128xf32>
    %12 = arith.addf %9, %11 : vector<8x128xf32>
    %c0_11 = arith.constant 0 : index
    %c0_12 = arith.constant 0 : index
    %13 = vector.load %arg6[%c0_11, %c0_12] : memref<8x128xf32, #tpu.memory_space<vmem>>, vector<8x128xf32>
    tpu.vector_store %arg6[%c0_11, %c0_12], %12 {strides = array<i32>} : memref<8x128xf32, #tpu.memory_space<vmem>>, vector<8x128xf32>,
    return
  }
  func.func @transform_0(%arg0: i32) -> (i32, i32) {
    %c0_i32 = arith.constant 0 : i32
    %c0_i32_0 = arith.constant 0 : i32
    return %arg0, %c0_i32 : i32, i32
  }
  func.func @transform_1(%arg0: i32) -> (i32, i32) {
    %c0_i32 = arith.constant 0 : i32
    %c0_i32_0 = arith.constant 0 : i32
    %c0_i32_1 = arith.constant 0 : i32
    return %c0_i32, %c0_i32_0 : i32, i32
  }
  func.func @transform_2(%arg0: i32) -> (i32, i32) {
    %c0_i32 = arith.constant 0 : i32
    %c0_i32_0 = arith.constant 0 : i32
    %c0_i32_1 = arith.constant 0 : i32
    return %c0_i32, %c0_i32_0 : i32, i32
  }
  func.func @transform_3(%arg0: i32) -> (i32, i32) {
    %c0_i32 = arith.constant 0 : i32
    %c0_i32_0 = arith.constant 0 : i32
    %c0_i32_1 = arith.constant 0 : i32
    return %c0_i32, %c0_i32_0 : i32, i32
  }
  func.func @transform_4(%arg0: i32) -> (i32, i32) {
    %c0_i32 = arith.constant 0 : i32
    %c0_i32_0 = arith.constant 0 : i32
    %c0_i32_1 = arith.constant 0 : i32
    return %c0_i32, %c0_i32_0 : i32, i32
  }
  func.func @transform_5(%arg0: i32) -> (i32, i32) {
    %c0_i32 = arith.constant 0 : i32
    %c0_i32_0 = arith.constant 0 : i32
    return %arg0, %c0_i32 : i32, i32
  }
}

</mosaic_0001>

<bundles_post_ra>
// kernel: tpu_custom_call.1
= control target key start
LH: loop header
LB: loop body
LE: loop exit
PB: predicated region body
PF: predicated region fallthrough
CT: control target
= control target key end

     0   :  { %10 = vsyncpa [#allocation3], 0  ;;  %s321_s0 = inlined_call_operand.hbm [shape: f32[8,6], index: 0, kind: input, shape index: {}]   ;;  %s322_s1 = inlined_call_operand.hbm [shape: f32[6,20], index: 1, kind: input, shape index: {}]   ;;  %s323_s2 = inlined_call_operand.vmem [shape: f32[1,20], index: 2, kind: input, shape index: {}]   ;;  %s324_s3 = inlined_call_operand.hbm [shape: f32[20,128], index: 3, kind: input, shape index: {}]   ;;  %s325_s4 = inlined_call_operand.vmem [shape: f32[1,128], index: 4, kind: input, shape index: {}]   ;;  %s326_s5 = inlined_call_operand.hbm [shape: f32[8,128], index: 5, kind: output, shape index: {}]  }
   0x1   :  { %11 = vsyncpa [#allocation6], 0  ;;  %s29_s20 = sshll.u32 %s322_s1, 4  ;;  %s30_s20 = int_to_ptr.hbm [resolvable:$true] %s29_s20 }
   0x2   :  { %12 = vsyncpa [#allocation4], 0  ;;  %s267_s21 = smov [#allocation5]   ;;  %s18_s25 = sshll.u32 %s321_s0, 4  ;;  %s19_s25 = int_to_ptr.hbm [resolvable:$true] %s18_s25 }
   0x3   :  { %s31_s22 = sshll.u32 %s267_s21, 4  ;;  %s268_s26 = smov [#allocation2]   ;;  %s32_s22 = int_to_ptr.vmem [resolvable:$true] %s31_s22 }
   0x4   :  { %34 = dma.hbm_to_vmem [thread:$0]  %s30_s20, 128, %s32_s22, [#allocation6]  }
   0x5   :  { %s20_s27 = sshll.u32 %s268_s26, 4  ;;  %s41_s30 = sshll.u32 %s324_s3, 4  ;;  %s21_s27 = int_to_ptr.vmem [resolvable:$true] %s20_s27  ;;  %s42_s30 = int_to_ptr.hbm [resolvable:$true] %s41_s30 }
   0x6   :  { %23 = dma.hbm_to_vmem [thread:$0]  %s19_s25, 128, %s21_s27, [#allocation3]  }
   0x7   :  { %s269_s1 = smov [#allocation7]   ;;  %s270_s7 = smov 128  }
   0x8   :  { %s43_s6 = sshll.u32 %s269_s1, 4  ;;  %s271_s8 = smov 8   ;;  %s44_s6 = int_to_ptr.vmem [resolvable:$true] %s43_s6 }
   0x9   :  { %49 = dma.hbm_to_vmem [thread:$0]  %s42_s30, 384, %s44_s6, [#allocation6], %s270_s7, %s270_s7, %s271_s8  }
   0xa   :  { %261 = dma.done.wait [#allocation3], 128  }
   0xb   :  { %262 = vsyncadd [#allocation3], 4294967168 }
   0xc   :  { %263 = dma.done.wait [#allocation6], 512  }
   0xd   :  { %264 = vsyncadd [#allocation6], 4294966784  ;;  %vm74_vm0 = vcmask 1045504   ;;  %vm70_vm1 = vcmask 48128   ;;  %v65_v0 = vld [vmem:[#allocation5] sm:$0x3f] }
   0xe   :  { %v64_v1 = vld [vmem:[#allocation2] sm:$0xff]  ;;  %153 = vmatpush.msk.msra.mxu0 %vm74_vm0, %v65_v0  ;;  %vm110_vm2 = vcmask 1043456   ;;  %v100_v3 = vld [vmem:[#allocation7 + $0x8] sm:$0xff]  ;;  %v99_v4 = vld [vmem:[#allocation7] sm:$0xff]  ;;  %vm106_vm3 = vcmask 162816   ;;  %s272_s11 = smov [#allocation8]  }
   0xf   :  { %154 = vmatmul.msk.f32.vlgmr.msra.gmra.mxu0 %vm70_vm1, %v64_v1  ;;  %v101_v2 = vld [vmem:[#allocation7 + $0x10] sm:$0xf]  ;;  %s140_s12 = sshll.u32 %s272_s11, 4  ;;  %s142_s15 = sshll.u32 %s326_s5, 4  ;;  %s141_s12 = int_to_ptr.vmem [resolvable:$true] %s140_s12  ;;  %s143_s15 = int_to_ptr.hbm [resolvable:$true] %s142_s15 }
  0x10   :  { %155 = vmatpush.msk.msra.mxu1 %vm110_vm2, %v101_v2  ;;  %v163_v5 = vld [vmem:[%s323_s2] ss:$0 sm:$0xff] }
  0x11   :  { %v164_v9 = vld [vmem:[%s325_s4] ss:$0 sm:$0xff] }
  0x12   :  { %128 = vmatpush.msra.mxu1 %v100_v3 }
  0x14   :  { %129 = vmatpush.msra.mxu1 %v99_v4 }
  0x8c   :  { %v95_v6 = vpop.f32.mrf.mxu0 }
  0x8d   :  { %v96_v7 = vadd.f32 %v163_v5, %v95_v6 }
  0x8f   :  { %v98_v8 = vmax.f32 %v96_v7, 0.0 }
  0x91   :  { %156 = vmatmul.msk.f32.vlgmr.msra.gmra.mxu1 %vm106_vm3, %v98_v8 }
 0x10e   :  { %v131_v10 = vpop.f32.mrf.mxu1 }
 0x10f   :  { %v132_v11 = vadd.f32 %v164_v9, %v131_v10 }
 0x111   :  { %134 = vst [vmem:[#allocation8] sm:$0xff] %v132_v11 }
 0x112   :  { %145 = dma.vmem_to_hbm [thread:$0]  %s141_s12, 128, %s143_s15, [#allocation4]  }
 0x113   :  { %265 = dma.done.wait [#allocation4], 128  }
 0x114   :  { %266 = vsyncadd [#allocation4], 4294967168 }
 0x115   :  { %150 = vsyncpa [#allocation3], 1 }
 0x116   :  { %151 = vsyncpa [#allocation6], 1 }
 0x117   :  { %152 = vsyncpa [#allocation4], 1 }

</bundles_post_ra>
